<compile_context>
chip_gen: v7x
topology: tpu7x:2x2x1
jax: 0.10.0
libtpu: 0.0.40
codegen_flags: <defaults>
</compile_context>

<pallas_src>
import functools

import jax
import jax.numpy as jnp
from jax.experimental import pallas as pl
from jax.experimental.pallas import tpu as pltpu


def _round_up(x, m):
    return (x + m - 1) // m * m


def _dense_sigmoid(x, w, b):
    """One Linear+Sigmoid layer with the batch on the lane axis.

    x: (K, TM)  activations, lanes = batch rows
    w: (N, K)   PyTorch nn.Linear layout [out_features, in_features]
    b: (N, 1)
    returns (N, TM)

    The K-contraction (K <= 8) is unrolled into VPU broadcast-multiply-adds,
    avoiding 128/256-padded MXU matmuls entirely.
    """
    K = x.shape[0]
    acc = w[:, 0:1] * x[0:1, :] + b          # bias folded into first term
    for k in range(1, K):
        acc = acc + w[:, k:k + 1] * x[k:k + 1, :]
    return jax.nn.sigmoid(acc)


def mlp_kernel(x_ref, w1_ref, b1_ref, w2_ref, b2_ref, w3_ref, b3_ref, o_ref):
    xt = x_ref[...]                                      # (8, TM) f32
    h = _dense_sigmoid(xt, w1_ref[...], b1_ref[...])     # (6, TM)
    h = _dense_sigmoid(h, w2_ref[...], b2_ref[...])      # (4, TM)
    h = _dense_sigmoid(h, w3_ref[...], b3_ref[...])      # (1, TM)
    o_ref[...] = h.astype(o_ref.dtype)                   # (1, TM) lane-dense


@functools.partial(jax.jit, static_argnames=("tile",))
def mlp_forward(x, params, *, tile=2048):
    """x: [B, 8] float32; params: PyTorch-layout weights (w: [out, in], b: [out, 1])."""
    w1, b1 = params["w1"], params["b1"]
    w2, b2 = params["w2"], params["b2"]
    w3, b3 = params["w3"], params["b3"]
    B, F = x.shape
    assert F == 8

    # Tile size: multiple of 128 (lane width); don't over-allocate for tiny B.
    tm = _round_up(min(tile, _round_up(B, 128)), 128)
    b_pad = _round_up(B, tm)
    nt = b_pad // tm

    # Layout plumbing outside the kernel: pad batch to a tile multiple and put
    # it on the fast (lane) axis.
    xt = jnp.pad(x, ((0, b_pad - B), (0, 0))).T          # (8, b_pad)

    # Constant index_map -> block never changes -> stays resident in VMEM.
    full_resident = lambda a: pl.BlockSpec(a.shape, lambda i, _a=a: (0,) * _a.ndim)

    out = pl.pallas_call(
        mlp_kernel,
        out_shape=jax.ShapeDtypeStruct((1, b_pad), jnp.float32),
        grid_spec=pltpu.PrefetchScalarGridSpec(
            num_scalar_prefetch=0,
            grid=(nt,),
            in_specs=[
                pl.BlockSpec((8, tm), lambda i: (0, i)),   # streamed batch tile
                full_resident(w1), full_resident(b1),
                full_resident(w2), full_resident(b2),
                full_resident(w3), full_resident(b3),
            ],
            out_specs=pl.BlockSpec((1, tm), lambda i: (0, i)),
        ),
        compiler_params=pltpu.CompilerParams(
            dimension_semantics=("parallel",)),
    )(xt, w1, b1, w2, b2, w3, b3)

    # (1, b_pad) flattens in exact batch order; strip padding.
    return out.reshape(b_pad, 1)[:B]


def init_params(key):
    """PyTorch nn.Linear default init: U(-1/sqrt(fan_in), 1/sqrt(fan_in)),
    weights stored in PyTorch layout [out_features, in_features]."""
    def linear_init(k, fan_in, fan_out):
        kw, kb = jax.random.split(k)
        bound = 1.0 / jnp.sqrt(jnp.float32(fan_in))
        w = jax.random.uniform(kw, (fan_out, fan_in), jnp.float32, -bound, bound)
        b = jax.random.uniform(kb, (fan_out, 1), jnp.float32, -bound, bound)
        return w, b

    k1, k2, k3 = jax.random.split(key, 3)
    w1, b1 = linear_init(k1, 8, 6)
    w2, b2 = linear_init(k2, 6, 4)
    w3, b3 = linear_init(k3, 4, 1)
    return {"w1": w1, "b1": b1, "w2": w2, "b2": b2, "w3": w3, "b3": b3}


def reference_forward(x, params):
    hp = jax.lax.Precision.HIGHEST
    h = jax.nn.sigmoid(jnp.dot(x, params["w1"].T, precision=hp) + params["b1"][:, 0])
    h = jax.nn.sigmoid(jnp.dot(h, params["w2"].T, precision=hp) + params["b2"][:, 0])
    h = jax.nn.sigmoid(jnp.dot(h, params["w3"].T, precision=hp) + params["b3"][:, 0])
    return h


if __name__ == "__main__":
    key = jax.random.PRNGKey(0)
    kx, kp = jax.random.split(key)

    B = 1000  # small demo batch; exercises the grid (2 tiles of 512) + padding
    x = jax.random.normal(kx, (B, 8), jnp.float32)
    params = init_params(kp)

    out = mlp_forward(x, params, tile=512)
    out = jax.block_until_ready(out)

    ref = reference_forward(x, params)
    assert out.shape == (B, 1)
    assert jnp.allclose(out, ref, atol=1e-5, rtol=1e-5), "mismatch vs JAX reference"

    print("KERNEL_OK")
</pallas_src>

<mosaic_0001>
module attributes {stable_mosaic.version = 11 : i64} {
  func.func @mlp_kernel(%arg0: i32, %arg1: memref<8x512xf32, #tpu.memory_space<vmem>>, %arg2: memref<6x8xf32, #tpu.memory_space<vmem>>, %arg3: memref<6x1xf32, #tpu.memory_space<vmem>>, %arg4: memref<4x6xf32, #tpu.memory_space<vmem>>, %arg5: memref<4x1xf32, #tpu.memory_space<vmem>>, %arg6: memref<1x4xf32, #tpu.memory_space<vmem>>, %arg7: memref<1x1xf32, #tpu.memory_space<vmem>>, %arg8: memref<1x512xf32, #tpu.memory_space<vmem>>) attributes {dimension_semantics = [#tpu.dimension_semantics<parallel>], iteration_bounds = array<i64: 2>, scalar_prefetch = 0 : i64, scratch_operands = 0 : i64, tpu.core_type = #tpu.core_type<tc>, window_params = [{transform_indices = @transform_0, window_bounds = array<i64: 8, 512>}, {pipeline_mode = #tpu.pipeline_mode<synchronous>, transform_indices = @transform_1, window_bounds = array<i64: 6, 8>}, {pipeline_mode = #tpu.pipeline_mode<synchronous>, transform_indices = @transform_2, window_bounds = array<i64: 6, 1>}, {pipeline_mode = #tpu.pipeline_mode<synchronous>, transform_indices = @transform_3, window_bounds = array<i64: 4, 6>}, {pipeline_mode = #tpu.pipeline_mode<synchronous>, transform_indices = @transform_4, window_bounds = array<i64: 4, 1>}, {pipeline_mode = #tpu.pipeline_mode<synchronous>, transform_indices = @transform_5, window_bounds = array<i64: 1, 4>}, {pipeline_mode = #tpu.pipeline_mode<synchronous>, transform_indices = @transform_6, window_bounds = array<i64: 1, 1>}, {transform_indices = @transform_7, window_bounds = array<i64: 1, 512>}]} {
    %c0 = arith.constant 0 : index
    %c0_0 = arith.constant 0 : index
    %0 = vector.load %arg1[%c0, %c0_0] : memref<8x512xf32, #tpu.memory_space<vmem>>, vector<8x512xf32>
    %c0_1 = arith.constant 0 : index
    %c0_2 = arith.constant 0 : index
    %1 = vector.load %arg2[%c0_1, %c0_2] : memref<6x8xf32, #tpu.memory_space<vmem>>, vector<6x8xf32>
    %c0_3 = arith.constant 0 : index
    %c0_4 = arith.constant 0 : index
    %2 = vector.load %arg3[%c0_3, %c0_4] : memref<6x1xf32, #tpu.memory_space<vmem>>, vector<6x1xf32>
    %3 = vector.extract_strided_slice %1 {offsets = [0, 0], sizes = [6, 1], strides = [1, 1]} : vector<6x8xf32> to vector<6x1xf32>
    %4 = vector.extract_strided_slice %0 {offsets = [0, 0], sizes = [1, 512], strides = [1, 1]} : vector<8x512xf32> to vector<1x512xf32>
    %5 = vector.broadcast %3 : vector<6x1xf32> to vector<6x512xf32>
    %6 = vector.broadcast %4 : vector<1x512xf32> to vector<6x512xf32>
    %7 = arith.mulf %5, %6 : vector<6x512xf32>
    %8 = vector.broadcast %2 : vector<6x1xf32> to vector<6x512xf32>
    %9 = arith.addf %7, %8 : vector<6x512xf32>
    %10 = vector.extract_strided_slice %1 {offsets = [0, 1], sizes = [6, 1], strides = [1, 1]} : vector<6x8xf32> to vector<6x1xf32>
    %11 = vector.extract_strided_slice %0 {offsets = [1, 0], sizes = [1, 512], strides = [1, 1]} : vector<8x512xf32> to vector<1x512xf32>
    %12 = vector.broadcast %10 : vector<6x1xf32> to vector<6x512xf32>
    %13 = vector.broadcast %11 : vector<1x512xf32> to vector<6x512xf32>
    %14 = arith.mulf %12, %13 : vector<6x512xf32>
    %15 = arith.addf %9, %14 : vector<6x512xf32>
    %16 = vector.extract_strided_slice %1 {offsets = [0, 2], sizes = [6, 1], strides = [1, 1]} : vector<6x8xf32> to vector<6x1xf32>
    %17 = vector.extract_strided_slice %0 {offsets = [2, 0], sizes = [1, 512], strides = [1, 1]} : vector<8x512xf32> to vector<1x512xf32>
    %18 = vector.broadcast %16 : vector<6x1xf32> to vector<6x512xf32>
    %19 = vector.broadcast %17 : vector<1x512xf32> to vector<6x512xf32>
    %20 = arith.mulf %18, %19 : vector<6x512xf32>
    %21 = arith.addf %15, %20 : vector<6x512xf32>
    %22 = vector.extract_strided_slice %1 {offsets = [0, 3], sizes = [6, 1], strides = [1, 1]} : vector<6x8xf32> to vector<6x1xf32>
    %23 = vector.extract_strided_slice %0 {offsets = [3, 0], sizes = [1, 512], strides = [1, 1]} : vector<8x512xf32> to vector<1x512xf32>
    %24 = vector.broadcast %22 : vector<6x1xf32> to vector<6x512xf32>
    %25 = vector.broadcast %23 : vector<1x512xf32> to vector<6x512xf32>
    %26 = arith.mulf %24, %25 : vector<6x512xf32>
    %27 = arith.addf %21, %26 : vector<6x512xf32>
    %28 = vector.extract_strided_slice %1 {offsets = [0, 4], sizes = [6, 1], strides = [1, 1]} : vector<6x8xf32> to vector<6x1xf32>
    %29 = vector.extract_strided_slice %0 {offsets = [4, 0], sizes = [1, 512], strides = [1, 1]} : vector<8x512xf32> to vector<1x512xf32>
    %30 = vector.broadcast %28 : vector<6x1xf32> to vector<6x512xf32>
    %31 = vector.broadcast %29 : vector<1x512xf32> to vector<6x512xf32>
    %32 = arith.mulf %30, %31 : vector<6x512xf32>
    %33 = arith.addf %27, %32 : vector<6x512xf32>
    %34 = vector.extract_strided_slice %1 {offsets = [0, 5], sizes = [6, 1], strides = [1, 1]} : vector<6x8xf32> to vector<6x1xf32>
    %35 = vector.extract_strided_slice %0 {offsets = [5, 0], sizes = [1, 512], strides = [1, 1]} : vector<8x512xf32> to vector<1x512xf32>
    %36 = vector.broadcast %34 : vector<6x1xf32> to vector<6x512xf32>
    %37 = vector.broadcast %35 : vector<1x512xf32> to vector<6x512xf32>
    %38 = arith.mulf %36, %37 : vector<6x512xf32>
    %39 = arith.addf %33, %38 : vector<6x512xf32>
    %40 = vector.extract_strided_slice %1 {offsets = [0, 6], sizes = [6, 1], strides = [1, 1]} : vector<6x8xf32> to vector<6x1xf32>
    %41 = vector.extract_strided_slice %0 {offsets = [6, 0], sizes = [1, 512], strides = [1, 1]} : vector<8x512xf32> to vector<1x512xf32>
    %42 = vector.broadcast %40 : vector<6x1xf32> to vector<6x512xf32>
    %43 = vector.broadcast %41 : vector<1x512xf32> to vector<6x512xf32>
    %44 = arith.mulf %42, %43 : vector<6x512xf32>
    %45 = arith.addf %39, %44 : vector<6x512xf32>
    %46 = vector.extract_strided_slice %1 {offsets = [0, 7], sizes = [6, 1], strides = [1, 1]} : vector<6x8xf32> to vector<6x1xf32>
    %47 = vector.extract_strided_slice %0 {offsets = [7, 0], sizes = [1, 512], strides = [1, 1]} : vector<8x512xf32> to vector<1x512xf32>
    %48 = vector.broadcast %46 : vector<6x1xf32> to vector<6x512xf32>
    %49 = vector.broadcast %47 : vector<1x512xf32> to vector<6x512xf32>
    %50 = arith.mulf %48, %49 : vector<6x512xf32>
    %51 = arith.addf %45, %50 : vector<6x512xf32>
    %52 = arith.negf %51 : vector<6x512xf32>
    %53 = math.exp %52 : vector<6x512xf32>
    %cst = arith.constant 1.000000e+00 : f32
    %54 = vector.broadcast %cst : f32 to vector<6x512xf32>
    %55 = arith.addf %54, %53 : vector<6x512xf32>
    %56 = arith.divf %54, %55 : vector<6x512xf32>
    %c0_5 = arith.constant 0 : index
    %c0_6 = arith.constant 0 : index
    %57 = vector.load %arg4[%c0_5, %c0_6] : memref<4x6xf32, #tpu.memory_space<vmem>>, vector<4x6xf32>
    %c0_7 = arith.constant 0 : index
    %c0_8 = arith.constant 0 : index
    %58 = vector.load %arg5[%c0_7, %c0_8] : memref<4x1xf32, #tpu.memory_space<vmem>>, vector<4x1xf32>
    %59 = vector.extract_strided_slice %57 {offsets = [0, 0], sizes = [4, 1], strides = [1, 1]} : vector<4x6xf32> to vector<4x1xf32>
    %60 = vector.extract_strided_slice %56 {offsets = [0, 0], sizes = [1, 512], strides = [1, 1]} : vector<6x512xf32> to vector<1x512xf32>
    %61 = vector.broadcast %59 : vector<4x1xf32> to vector<4x512xf32>
    %62 = vector.broadcast %60 : vector<1x512xf32> to vector<4x512xf32>
    %63 = arith.mulf %61, %62 : vector<4x512xf32>
    %64 = vector.broadcast %58 : vector<4x1xf32> to vector<4x512xf32>
    %65 = arith.addf %63, %64 : vector<4x512xf32>
    %66 = vector.extract_strided_slice %57 {offsets = [0, 1], sizes = [4, 1], strides = [1, 1]} : vector<4x6xf32> to vector<4x1xf32>
    %67 = vector.extract_strided_slice %56 {offsets = [1, 0], sizes = [1, 512], strides = [1, 1]} : vector<6x512xf32> to vector<1x512xf32>
    %68 = vector.broadcast %66 : vector<4x1xf32> to vector<4x512xf32>
    %69 = vector.broadcast %67 : vector<1x512xf32> to vector<4x512xf32>
    %70 = arith.mulf %68, %69 : vector<4x512xf32>
    %71 = arith.addf %65, %70 : vector<4x512xf32>
    %72 = vector.extract_strided_slice %57 {offsets = [0, 2], sizes = [4, 1], strides = [1, 1]} : vector<4x6xf32> to vector<4x1xf32>
    %73 = vector.extract_strided_slice %56 {offsets = [2, 0], sizes = [1, 512], strides = [1, 1]} : vector<6x512xf32> to vector<1x512xf32>
    %74 = vector.broadcast %72 : vector<4x1xf32> to vector<4x512xf32>
    %75 = vector.broadcast %73 : vector<1x512xf32> to vector<4x512xf32>
    %76 = arith.mulf %74, %75 : vector<4x512xf32>
    %77 = arith.addf %71, %76 : vector<4x512xf32>
    %78 = vector.extract_strided_slice %57 {offsets = [0, 3], sizes = [4, 1], strides = [1, 1]} : vector<4x6xf32> to vector<4x1xf32>
    %79 = vector.extract_strided_slice %56 {offsets = [3, 0], sizes = [1, 512], strides = [1, 1]} : vector<6x512xf32> to vector<1x512xf32>
    %80 = vector.broadcast %78 : vector<4x1xf32> to vector<4x512xf32>
    %81 = vector.broadcast %79 : vector<1x512xf32> to vector<4x512xf32>
    %82 = arith.mulf %80, %81 : vector<4x512xf32>
    %83 = arith.addf %77, %82 : vector<4x512xf32>
    %84 = vector.extract_strided_slice %57 {offsets = [0, 4], sizes = [4, 1], strides = [1, 1]} : vector<4x6xf32> to vector<4x1xf32>
    %85 = vector.extract_strided_slice %56 {offsets = [4, 0], sizes = [1, 512], strides = [1, 1]} : vector<6x512xf32> to vector<1x512xf32>
    %86 = vector.broadcast %84 : vector<4x1xf32> to vector<4x512xf32>
    %87 = vector.broadcast %85 : vector<1x512xf32> to vector<4x512xf32>
    %88 = arith.mulf %86, %87 : vector<4x512xf32>
    %89 = arith.addf %83, %88 : vector<4x512xf32>
    %90 = vector.extract_strided_slice %57 {offsets = [0, 5], sizes = [4, 1], strides = [1, 1]} : vector<4x6xf32> to vector<4x1xf32>
    %91 = vector.extract_strided_slice %56 {offsets = [5, 0], sizes = [1, 512], strides = [1, 1]} : vector<6x512xf32> to vector<1x512xf32>
    %92 = vector.broadcast %90 : vector<4x1xf32> to vector<4x512xf32>
    %93 = vector.broadcast %91 : vector<1x512xf32> to vector<4x512xf32>
    %94 = arith.mulf %92, %93 : vector<4x512xf32>
    %95 = arith.addf %89, %94 : vector<4x512xf32>
    %96 = arith.negf %95 : vector<4x512xf32>
    %97 = math.exp %96 : vector<4x512xf32>
    %cst_9 = arith.constant 1.000000e+00 : f32
    %98 = vector.broadcast %cst_9 : f32 to vector<4x512xf32>
    %99 = arith.addf %98, %97 : vector<4x512xf32>
    %100 = arith.divf %98, %99 : vector<4x512xf32>
    %c0_10 = arith.constant 0 : index
    %c0_11 = arith.constant 0 : index
    %101 = vector.load %arg6[%c0_10, %c0_11] : memref<1x4xf32, #tpu.memory_space<vmem>>, vector<1x4xf32>
    %c0_12 = arith.constant 0 : index
    %c0_13 = arith.constant 0 : index
    %102 = vector.load %arg7[%c0_12, %c0_13] : memref<1x1xf32, #tpu.memory_space<vmem>>, vector<1x1xf32>
    %103 = vector.extract_strided_slice %101 {offsets = [0, 0], sizes = [1, 1], strides = [1, 1]} : vector<1x4xf32> to vector<1x1xf32>
    %104 = vector.extract_strided_slice %100 {offsets = [0, 0], sizes = [1, 512], strides = [1, 1]} : vector<4x512xf32> to vector<1x512xf32>
    %105 = vector.broadcast %103 : vector<1x1xf32> to vector<1x512xf32>
    %106 = arith.mulf %105, %104 : vector<1x512xf32>
    %107 = vector.broadcast %102 : vector<1x1xf32> to vector<1x512xf32>
    %108 = arith.addf %106, %107 : vector<1x512xf32>
    %109 = vector.extract_strided_slice %101 {offsets = [0, 1], sizes = [1, 1], strides = [1, 1]} : vector<1x4xf32> to vector<1x1xf32>
    %110 = vector.extract_strided_slice %100 {offsets = [1, 0], sizes = [1, 512], strides = [1, 1]} : vector<4x512xf32> to vector<1x512xf32>
    %111 = vector.broadcast %109 : vector<1x1xf32> to vector<1x512xf32>
    %112 = arith.mulf %111, %110 : vector<1x512xf32>
    %113 = arith.addf %108, %112 : vector<1x512xf32>
    %114 = vector.extract_strided_slice %101 {offsets = [0, 2], sizes = [1, 1], strides = [1, 1]} : vector<1x4xf32> to vector<1x1xf32>
    %115 = vector.extract_strided_slice %100 {offsets = [2, 0], sizes = [1, 512], strides = [1, 1]} : vector<4x512xf32> to vector<1x512xf32>
    %116 = vector.broadcast %114 : vector<1x1xf32> to vector<1x512xf32>
    %117 = arith.mulf %116, %115 : vector<1x512xf32>
    %118 = arith.addf %113, %117 : vector<1x512xf32>
    %119 = vector.extract_strided_slice %101 {offsets = [0, 3], sizes = [1, 1], strides = [1, 1]} : vector<1x4xf32> to vector<1x1xf32>
    %120 = vector.extract_strided_slice %100 {offsets = [3, 0], sizes = [1, 512], strides = [1, 1]} : vector<4x512xf32> to vector<1x512xf32>
    %121 = vector.broadcast %119 : vector<1x1xf32> to vector<1x512xf32>
    %122 = arith.mulf %121, %120 : vector<1x512xf32>
    %123 = arith.addf %118, %122 : vector<1x512xf32>
    %124 = arith.negf %123 : vector<1x512xf32>
    %125 = math.exp %124 : vector<1x512xf32>
    %cst_14 = arith.constant 1.000000e+00 : f32
    %126 = vector.broadcast %cst_14 : f32 to vector<1x512xf32>
    %127 = arith.addf %126, %125 : vector<1x512xf32>
    %128 = arith.divf %126, %127 : vector<1x512xf32>
    %c0_15 = arith.constant 0 : index
    %c0_16 = arith.constant 0 : index
    %129 = vector.load %arg8[%c0_15, %c0_16] : memref<1x512xf32, #tpu.memory_space<vmem>>, vector<1x512xf32>
    tpu.vector_store %arg8[%c0_15, %c0_16], %128 {strides = array<i32>} : memref<1x512xf32, #tpu.memory_space<vmem>>, vector<1x512xf32>,
    return
  }
  func.func @transform_0(%arg0: i32) -> (i32, i32) {
    %c0_i32 = arith.constant 0 : i32
    %c0_i32_0 = arith.constant 0 : i32
    return %c0_i32, %arg0 : i32, i32
  }
  func.func @transform_1(%arg0: i32) -> (i32, i32) {
    %c0_i32 = arith.constant 0 : i32
    %c0_i32_0 = arith.constant 0 : i32
    %c0_i32_1 = arith.constant 0 : i32
    return %c0_i32, %c0_i32_0 : i32, i32
  }
  func.func @transform_2(%arg0: i32) -> (i32, i32) {
    %c0_i32 = arith.constant 0 : i32
    %c0_i32_0 = arith.constant 0 : i32
    %c0_i32_1 = arith.constant 0 : i32
    return %c0_i32, %c0_i32_0 : i32, i32
  }
  func.func @transform_3(%arg0: i32) -> (i32, i32) {
    %c0_i32 = arith.constant 0 : i32
    %c0_i32_0 = arith.constant 0 : i32
    %c0_i32_1 = arith.constant 0 : i32
    return %c0_i32, %c0_i32_0 : i32, i32
  }
  func.func @transform_4(%arg0: i32) -> (i32, i32) {
    %c0_i32 = arith.constant 0 : i32
    %c0_i32_0 = arith.constant 0 : i32
    %c0_i32_1 = arith.constant 0 : i32
    return %c0_i32, %c0_i32_0 : i32, i32
  }
  func.func @transform_5(%arg0: i32) -> (i32, i32) {
    %c0_i32 = arith.constant 0 : i32
    %c0_i32_0 = arith.constant 0 : i32
    %c0_i32_1 = arith.constant 0 : i32
    return %c0_i32, %c0_i32_0 : i32, i32
  }
  func.func @transform_6(%arg0: i32) -> (i32, i32) {
    %c0_i32 = arith.constant 0 : i32
    %c0_i32_0 = arith.constant 0 : i32
    %c0_i32_1 = arith.constant 0 : i32
    return %c0_i32, %c0_i32_0 : i32, i32
  }
  func.func @transform_7(%arg0: i32) -> (i32, i32) {
    %c0_i32 = arith.constant 0 : i32
    %c0_i32_0 = arith.constant 0 : i32
    return %c0_i32, %arg0 : i32, i32
  }
}

</mosaic_0001>

<bundles_post_ra>
// kernel: mlp_forward.1
= control target key start
LH: loop header
LB: loop body
LE: loop exit
PB: predicated region body
PF: predicated region fallthrough
CT: control target
= control target key end

     0   :  { %s1130_s26 = smov 0   ;;  %s1318_s0 = inlined_call_operand.vmem [shape: f32[8,1024], index: 0, kind: input, shape index: {}]   ;;  %s1319_s1 = inlined_call_operand.vmem [shape: f32[6,8], index: 1, kind: input, shape index: {}]   ;;  %s1320_s2 = inlined_call_operand.vmem [shape: f32[6,1], index: 2, kind: input, shape index: {}]   ;;  %s1321_s3 = inlined_call_operand.vmem [shape: f32[4,6], index: 3, kind: input, shape index: {}]   ;;  %s1322_s4 = inlined_call_operand.vmem [shape: f32[4,1], index: 4, kind: input, shape index: {}]   ;;  %s1323_s5 = inlined_call_operand.vmem [shape: f32[1,4], index: 5, kind: input, shape index: {}]   ;;  %s1324_s6 = inlined_call_operand.<no memory space> [shape: f32[1,1], index: 6, kind: input, shape index: {}]   ;;  %s1325_s7 = inlined_call_operand.vmem [shape: f32[1,1024], index: 7, kind: output, shape index: {}]  }
   0x1   :  { %v12_v0 = vstv %s1324_s6 }
   0x2   :  { %13 = vst [vmem:[#allocation2] sm:$0x1] %v12_v0 }
   0x3 LB: > { %s962_s27 = sadd.s32 4294967295, %s1076_s26   ;;  %p966_p0 = scmp.ge.s32.totalorder %s1076_s26, 1  ;;  %s1076_s26 = sphi %s1130_s26, %s19_s26  }
   0x4   : > { %p240_p1 = scmp.lt.s32.totalorder %s1076_s26, 3 }
   0x6   : > { %p241_p2 = pnand %p966_p0, %p240_p1 }
   0x7   : > { %v286_v1 = vld [vmem:[%s1319_s1] sm:$0x3f] (!%p241_p2)  ;;  %v1078_v2 = vmov (!%p241_p2), 1   ;;  %v1079_v3 = vmov (!%p241_p2), 0   ;;  %v1080_v5 = vmov (!%p241_p2), 2   ;;  %v1081_v6 = vmov (!%p241_p2), 3  }
   0x8   : > { %244 = sbr.rel (%p241_p2) target bundleno = 283 (0x11b), region = 48  ;;  %1002 = vset.pattern.permute.xlu1 (!%p241_p2), %v1078_v2  ;;  %1001 = vset.pattern.permute.xlu0 (!%p241_p2), %v1079_v3  ;;  %v287_v4 = vld [vmem:[%s1320_s2] sm:$0x3f] (!%p241_p2)  ;;  %v1082_v7 = vmov (!%p241_p2), 4   ;;  %v1083_v8 = vmov (!%p241_p2), 6   ;;  %v1084_v9 = vmov (!%p241_p2), 5   ;;  %v293_v15 = vlaneseq (!%p241_p2) }
   0x9   : > { %323 = vperm.xlu1 (!%p241_p2), %1002, %v286_v1   ;;  %290 = vperm.xlu0 (!%p241_p2), %1001, %v286_v1   ;;  %v543_v10 = vld [vmem:[%s1322_s4] sm:$0xf] (!%p241_p2)  ;;  %v1085_v11 = vmov (!%p241_p2), 7   ;;  %s967_s14 = sshll.u32 (!%p241_p2), %s962_s27, 2 }
   0xa   : > { %v542_v12 = vld [vmem:[%s1321_s3] sm:$0xf] (!%p241_p2)  ;;  %p272_p3 = scmp.lt.s32.totalorder (!%p241_p2), %s967_s14, 7  ;;  %v1159_v16 = vshrl.u32 (!%p241_p2), %v293_v15, 7  ;;  %vm909_vm0 = vcmp.lt.s32.totalorder (!%p241_p2), %v293_v15, 512 }
   0xb   : > { %v742_v13 = vld [vmem:[%s1323_s5] sm:$0x1] (!%p241_p2) }
   0xc   : > { %v743_v14 = vld [vmem:[#allocation2] sm:$0x1] (!%p241_p2)  ;;  %v1165_v17 = vsub.s32 (!%p241_p2), 1, %v1159_v16  ;;  %v1172_v20 = vsub.s32 (!%p241_p2), 0, %v1159_v16  ;;  %v1179_v23 = vsub.s32 (!%p241_p2), 2, %v1159_v16  ;;  %v1182_v24 = vsub.s32 (!%p241_p2), 3, %v1159_v16 }
   0xd   : > { %1003 = vset.pattern.permute.xlu1 (!%p241_p2), %v1080_v5  ;;  %315 = vperm.xlu0 (!%p241_p2), %1001, %v287_v4   ;;  %v1189_v27 = vsub.s32 (!%p241_p2), 4, %v1159_v16  ;;  %v1214_v39 = vsub.s32 (!%p241_p2), 5, %v1159_v16  ;;  %v468_v49 = vsub.s32 (!%p241_p2), 6, %v1159_v16 }
   0xe   : > { %351 = vperm.xlu1 (!%p241_p2), %1003, %v286_v1  }
   0xf   : > { %s1327_s14 = smov (!%p272_p3, %s967_s14), 7 }
  0x10   : > { %s968_s15 = sshll.u32 %s1327_s14, 3  ;;  %s280_s21 = scalar_lea.vmem %s1325_s7, %s1327_s14 }
  0x11   : > { %1004 = vset.pattern.permute.xlu0 %v1081_v6  ;;  %s275_s18 = scalar_lea.vmem %s1318_s0, %s968_s15 }
  0x12   : > { %1005 = vset.pattern.permute.xlu1 %v1082_v7  ;;  %379 = vperm.xlu0 %1004, %v286_v1   ;;  %v1167_v18 = vld [vmem:[%s275_s18] sm:$0xff]  ;;  %v1169_v19 = vld [vmem:[%s275_s18 + $0x8] sm:$0xff]  ;;  %v1174_v21 = vld [vmem:[%s275_s18 + $0x10] sm:$0xff] }
  0x13   : > { %407 = vperm.xlu1 %1005, %v286_v1   ;;  %v1176_v22 = vld [vmem:[%s275_s18 + $0x18] sm:$0xff]  ;;  %v329_v25 = vrot.slane %v1167_v18, %v1165_v17  ;;  %v333_v26 = vrot.slane %v1169_v19, %v1165_v17  ;;  %v337_v28 = vrot.slane %v1174_v21, %v1165_v17  ;;  %v296_v30 = vrot.slane %v1167_v18, %v1172_v20 }
  0x14   : > { %v341_v29 = vrot.slane %v1176_v22, %v1165_v17  ;;  %v300_v31 = vrot.slane %v1169_v19, %v1172_v20  ;;  %v304_v32 = vrot.slane %v1174_v21, %v1172_v20  ;;  %v308_v33 = vrot.slane %v1176_v22, %v1172_v20 }
  0x15   : > { %v357_v34 = vrot.slane %v1167_v18, %v1179_v23  ;;  %v361_v35 = vrot.slane %v1169_v19, %v1179_v23  ;;  %v365_v36 = vrot.slane %v1174_v21, %v1179_v23  ;;  %v369_v37 = vrot.slane %v1176_v22, %v1179_v23 }
  0x16   : > { %1007 = vset.pattern.permute.xlu0 %v1083_v8  ;;  %v385_v38 = vrot.slane %v1167_v18, %v1182_v24  ;;  %v389_v42 = vrot.slane %v1169_v19, %v1182_v24  ;;  %v393_v43 = vrot.slane %v1174_v21, %v1182_v24  ;;  %v397_v44 = vrot.slane %v1176_v22, %v1182_v24 }
  0x17   : > { %1006 = vset.pattern.permute.xlu1 %v1084_v9  ;;  %463 = vperm.xlu0 %1007, %v286_v1   ;;  %v413_v45 = vrot.slane %v1167_v18, %v1189_v27  ;;  %v417_v46 = vrot.slane %v1169_v19, %v1189_v27  ;;  %v421_v47 = vrot.slane %v1174_v21, %v1189_v27 }
  0x18   : > { %435 = vperm.xlu1 %1006, %v286_v1   ;;  %v425_v48 = vrot.slane %v1176_v22, %v1189_v27  ;;  %v441_v54 = vrot.slane %v1167_v18, %v1214_v39  ;;  %v445_v55 = vrot.slane %v1169_v19, %v1214_v39  ;;  %v449_v56 = vrot.slane %v1174_v21, %v1214_v39 }
  0x19   : > { %v453_v57 = vrot.slane %v1176_v22, %v1214_v39 }
  0x1b   : > { %1010 = vset.pattern.permute.xlu0 %v1079_v3 }
  0x1c   : > { %1008 = vset.pattern.permute.xlu1 %v1085_v11  ;;  %571 = vperm.xlu0 %1010, %v543_v10  }
  0x1d   : > { %491 = vperm.xlu1 %1008, %v286_v1  }
  0x20   : > { %1013 = vset.pattern.permute.xlu0 %v1081_v6 }
  0x21   : > { %1009 = vset.pattern.permute.xlu1 %v1079_v3  ;;  %635 = vperm.xlu0 %1013, %v542_v12  }
  0x22   : > { %546 = vperm.xlu1 %1009, %v542_v12  }
  0x25   : > { %1016 = vset.pattern.permute.xlu0 %v1079_v3 }
  0x26   : > { %1011 = vset.pattern.permute.xlu1 %v1078_v2  ;;  %746 = vperm.xlu0 %1016, %v742_v13  }
  0x27   : > { %579 = vperm.xlu1 %1011, %v542_v12  }
  0x2a   : > { %1019 = vset.pattern.permute.xlu0 %v1080_v5 }
  0x2b   : > { %1012 = vset.pattern.permute.xlu1 %v1080_v5  ;;  %799 = vperm.xlu0 %1019, %v742_v13  }
  0x2c   : > { %607 = vperm.xlu1 %1012, %v542_v12  }
  0x2f   : > { %1021 = vset.pattern.permute.xlu0 %v1081_v6 }
  0x30   : > { %1014 = vset.pattern.permute.xlu1 %v1082_v7 }
  0x31   : > { %663 = vperm.xlu1 %1014, %v542_v12  }
  0x35   : > { %1015 = vset.pattern.permute.xlu1 %v1084_v9 }
  0x36   : > { %691 = vperm.xlu1 %1015, %v542_v12   ;;  %v469_v12 = vrot.slane %v1167_v18, %v468_v49 }
  0x3a   : > { %1017 = vset.pattern.permute.xlu1 %v1078_v2 }
  0x3b   : > { %771 = vperm.xlu1 %1017, %v742_v13  }
  0x3f   : > { %1018 = vset.pattern.permute.xlu1 %v1079_v3 }
  0x40   : > { %759 = vperm.xlu1 %1018, %v743_v14   ;;  %v477_v14 = vrot.slane %v1174_v21, %v468_v49 }
  0x44   : > { %1020 = vset.pattern.permute.xlu1 %v1081_v6 }
  0x45   : > { %827 = vperm.xlu1 %1020, %v742_v13   ;;  %v473_v13 = vrot.slane %v1169_v19, %v468_v49 }
  0x88   : > { %v324_v40 = vpop.permute.xlu1 %323  ;;  %v291_v41 = vpop.permute.xlu0 %290 }
  0x89   : > { %v309_v50 = vmul.f32 %v296_v30, %v291_v41  ;;  %v310_v51 = vmul.f32 %v300_v31, %v291_v41  ;;  %v311_v52 = vmul.f32 %v304_v32, %v291_v41  ;;  %v312_v53 = vmul.f32 %v308_v33, %v291_v41 }
  0x8a   : > { %v342_v58 = vmul.f32 %v329_v25, %v324_v40  ;;  %v343_v59 = vmul.f32 %v333_v26, %v324_v40  ;;  %v344_v60 = vmul.f32 %v337_v28, %v324_v40  ;;  %v345_v61 = vmul.f32 %v341_v29, %v324_v40 }
  0x8b   : > { %v481_v25 = vrot.slane %v1176_v22, %v468_v49  ;;  %v496_v49 = vsub.s32 7, %v1159_v16 }
  0x8c   : > { %v316_v62 = vpop.permute.xlu0 %315 }
  0x8d   : > { %v318_v63 = vadd.f32 %v316_v62, %v309_v50  ;;  %v319_v0 = vadd.f32 %v316_v62, %v310_v51  ;;  %v320_v1 = vadd.f32 %v316_v62, %v311_v52  ;;  %v321_v2 = vadd.f32 %v316_v62, %v312_v53  ;;  %v352_v3 = vpop.permute.xlu1 %351 }
  0x8e   : > { %v370_v4 = vmul.f32 %v357_v34, %v352_v3  ;;  %v371_v5 = vmul.f32 %v361_v35, %v352_v3  ;;  %v372_v6 = vmul.f32 %v365_v36, %v352_v3  ;;  %v373_v7 = vmul.f32 %v369_v37, %v352_v3 }
  0x8f   : > { %v346_v8 = vadd.f32 %v342_v58, %v318_v63  ;;  %v347_v9 = vadd.f32 %v343_v59, %v319_v0  ;;  %v348_v10 = vadd.f32 %v344_v60, %v320_v1  ;;  %v349_v11 = vadd.f32 %v345_v61, %v321_v2 }
  0x90   : > { %v497_v1 = vrot.slane %v1167_v18, %v496_v49  ;;  %v501_v2 = vrot.slane %v1169_v19, %v496_v49  ;;  %v505_v3 = vrot.slane %v1174_v21, %v496_v49 }
  0x91   : > { %v374_v26 = vadd.f32 %v370_v4, %v346_v8  ;;  %v375_v28 = vadd.f32 %v371_v5, %v347_v9  ;;  %v376_v29 = vadd.f32 %v372_v6, %v348_v10  ;;  %v377_v30 = vadd.f32 %v373_v7, %v349_v11  ;;  %v380_v31 = vpop.permute.xlu0 %379 }
  0x92   : > { %v398_v32 = vmul.f32 %v385_v38, %v380_v31  ;;  %v399_v33 = vmul.f32 %v389_v42, %v380_v31  ;;  %v400_v34 = vmul.f32 %v393_v43, %v380_v31  ;;  %v401_v35 = vmul.f32 %v397_v44, %v380_v31  ;;  %v408_v36 = vpop.permute.xlu1 %407 }
  0x93   : > { %v426_v37 = vmul.f32 %v413_v45, %v408_v36  ;;  %v427_v40 = vmul.f32 %v417_v46, %v408_v36  ;;  %v428_v41 = vmul.f32 %v421_v47, %v408_v36  ;;  %v429_v50 = vmul.f32 %v425_v48, %v408_v36 }
  0x94   : > { %v402_v51 = vadd.f32 %v398_v32, %v374_v26  ;;  %v403_v52 = vadd.f32 %v399_v33, %v375_v28  ;;  %v404_v53 = vadd.f32 %v400_v34, %v376_v29  ;;  %v405_v58 = vadd.f32 %v401_v35, %v377_v30 }
  0x95   : > { %v509_v4 = vrot.slane %v1176_v22, %v496_v49 }
  0x96   : > { %v430_v59 = vadd.f32 %v426_v37, %v402_v51  ;;  %v431_v60 = vadd.f32 %v427_v40, %v403_v52  ;;  %v432_v61 = vadd.f32 %v428_v41, %v404_v53  ;;  %v433_v62 = vadd.f32 %v429_v50, %v405_v58  ;;  %v464_v63 = vpop.permute.xlu0 %463 }
  0x97   : > { %v436_v38 = vpop.permute.xlu1 %435  ;;  %v482_v42 = vmul.f32 %v469_v12, %v464_v63  ;;  %v483_v43 = vmul.f32 %v473_v13, %v464_v63  ;;  %v484_v44 = vmul.f32 %v477_v14, %v464_v63  ;;  %v485_v0 = vmul.f32 %v481_v25, %v464_v63 }
  0x98   : > { %v454_v45 = vmul.f32 %v441_v54, %v436_v38  ;;  %v455_v46 = vmul.f32 %v445_v55, %v436_v38  ;;  %v456_v47 = vmul.f32 %v449_v56, %v436_v38  ;;  %v457_v48 = vmul.f32 %v453_v57, %v436_v38 }
  0x9a   : > { %v458_v5 = vadd.f32 %v454_v45, %v430_v59  ;;  %v459_v6 = vadd.f32 %v455_v46, %v431_v60  ;;  %v460_v7 = vadd.f32 %v456_v47, %v432_v61  ;;  %v461_v8 = vadd.f32 %v457_v48, %v433_v62 }
  0x9c   : > { %v486_v9 = vadd.f32 %v482_v42, %v458_v5  ;;  %v487_v10 = vadd.f32 %v483_v43, %v459_v6  ;;  %v488_v11 = vadd.f32 %v484_v44, %v460_v7  ;;  %v489_v12 = vadd.f32 %v485_v0, %v461_v8  ;;  %v492_v54 = vpop.permute.xlu1 %491 }
  0x9d   : > { %v510_v55 = vmul.f32 %v497_v1, %v492_v54  ;;  %v511_v56 = vmul.f32 %v501_v2, %v492_v54  ;;  %v512_v57 = vmul.f32 %v505_v3, %v492_v54  ;;  %v513_v13 = vmul.f32 %v509_v4, %v492_v54  ;;  %v572_v1 = vpop.permute.xlu0 %571 }
  0x9f   : > { %v514_v18 = vadd.f32 %v510_v55, %v486_v9  ;;  %v515_v14 = vadd.f32 %v511_v56, %v487_v10  ;;  %v516_v19 = vadd.f32 %v512_v57, %v488_v11  ;;  %v517_v25 = vadd.f32 %v513_v13, %v489_v12 }
  0xa1   : > { %v970_v21 = vmul.f32 -1.442695, %v514_v18  ;;  %v971_v26 = vmul.f32 -1.442695, %v515_v14  ;;  %v972_v22 = vmul.f32 -1.442695, %v516_v19  ;;  %v547_v37 = vpop.permute.xlu1 %546 }
  0xa2   : > { %v973_v28 = vmul.f32 -1.442695, %v517_v25  ;;  %v636_v25 = vpop.permute.xlu0 %635 }
  0xa3   : > { %1022 = vpow2.f32 %v970_v21 }
  0xa4   : > { %1024 = vpow2.f32 %v971_v26 }
  0xa5   : > { %1026 = vpow2.f32 %v972_v22 }
  0xa6   : > { %1028 = vpow2.f32 %v973_v28  ;;  %v580_v40 = vpop.permute.xlu1 %579 }
  0xab   : > { %v608_v38 = vpop.permute.xlu1 %607 }
  0xad   : > { %v1023_v29 = vpop.eup %1022 }
  0xae   : > { %v1025_v30 = vpop.eup %1024  ;;  %v530_v31 = vadd.f32 1.0, %v1023_v29 }
  0xaf   : > { %v1027_v32 = vpop.eup %1026  ;;  %v531_v33 = vadd.f32 1.0, %v1025_v30 }
  0xb0   : > { %v1029_v34 = vpop.eup %1028  ;;  %v532_v35 = vadd.f32 1.0, %v1027_v32  ;;  %1030 = vrcp.f32 %v530_v31  ;;  %v664_v11 = vpop.permute.xlu1 %663 }
  0xb1   : > { %v533_v36 = vadd.f32 1.0, %v1029_v34  ;;  %1032 = vrcp.f32 %v531_v33 }
  0xb2   : > { %1034 = vrcp.f32 %v532_v35 }
  0xb3   : > { %1036 = vrcp.f32 %v533_v36 }
  0xb5   : > { %v692_v36 = vpop.permute.xlu1 %691 }
  0xba   : > { %v1248_v41 = vpop.eup %1030 }
  0xbb   : > { %v1250_v50 = vpop.eup %1032  ;;  %v552_v51 = vrot.slane %v1248_v41, %v1172_v20  ;;  %v585_v59 = vrot.slane %v1248_v41, %v1165_v17  ;;  %v613_v45 = vrot.slane %v1248_v41, %v1179_v23  ;;  %v641_v29 = vrot.slane %v1248_v41, %v1182_v24 }
  0xbc   : > { %v1254_v52 = vpop.eup %1034  ;;  %v556_v53 = vrot.slane %v1250_v50, %v1172_v20  ;;  %v589_v63 = vrot.slane %v1250_v50, %v1165_v17  ;;  %v617_v46 = vrot.slane %v1250_v50, %v1179_v23  ;;  %v673_v18 = vrot.slane %v1250_v50, %v1189_v27 }
  0xbd   : > { %v1258_v58 = vpop.eup %1036  ;;  %v560_v49 = vrot.slane %v1254_v52, %v1172_v20  ;;  %v565_v61 = vmul.f32 %v552_v51, %v547_v37  ;;  %v593_v43 = vrot.slane %v1254_v52, %v1165_v17  ;;  %v621_v47 = vrot.slane %v1254_v52, %v1179_v23 }
  0xbe   : > { %v564_v60 = vrot.slane %v1258_v58, %v1172_v20  ;;  %v566_v62 = vmul.f32 %v556_v53, %v547_v37  ;;  %v597_v44 = vrot.slane %v1258_v58, %v1165_v17  ;;  %v625_v48 = vrot.slane %v1258_v58, %v1179_v23 }
  0xbf   : > { %v567_v42 = vmul.f32 %v560_v49, %v547_v37  ;;  %v598_v2 = vmul.f32 %v585_v59, %v580_v40  ;;  %v599_v3 = vmul.f32 %v589_v63, %v580_v40  ;;  %v574_v4 = vadd.f32 %v572_v1, %v565_v61 }
  0xc0   : > { %v568_v0 = vmul.f32 %v564_v60, %v547_v37  ;;  %v575_v5 = vadd.f32 %v572_v1, %v566_v62  ;;  %v600_v6 = vmul.f32 %v593_v43, %v580_v40  ;;  %v601_v17 = vmul.f32 %v597_v44, %v580_v40 }
  0xc1   : > { %v576_v7 = vadd.f32 %v572_v1, %v567_v42  ;;  %v626_v9 = vmul.f32 %v613_v45, %v608_v38  ;;  %v627_v10 = vmul.f32 %v617_v46, %v608_v38  ;;  %v602_v12 = vadd.f32 %v598_v2, %v574_v4 }
  0xc2   : > { %v577_v8 = vadd.f32 %v572_v1, %v568_v0  ;;  %v603_v54 = vadd.f32 %v599_v3, %v575_v5  ;;  %v628_v55 = vmul.f32 %v621_v47, %v608_v38  ;;  %v629_v56 = vmul.f32 %v625_v48, %v608_v38  ;;  %v772_v5 = vpop.permute.xlu1 %771 }
  0xc3   : > { %v604_v57 = vadd.f32 %v600_v6, %v576_v7  ;;  %v669_v23 = vrot.slane %v1248_v41, %v1189_v27  ;;  %v677_v14 = vrot.slane %v1254_v52, %v1189_v27  ;;  %v681_v19 = vrot.slane %v1258_v58, %v1189_v27 }
  0xc4   : > { %v605_v13 = vadd.f32 %v601_v17, %v577_v8  ;;  %v630_v21 = vadd.f32 %v626_v9, %v602_v12  ;;  %v631_v26 = vadd.f32 %v627_v10, %v603_v54  ;;  %v645_v30 = vrot.slane %v1250_v50, %v1182_v24  ;;  %v747_v12 = vpop.permute.xlu0 %746 }
  0xc5   : > { %v632_v22 = vadd.f32 %v628_v55, %v604_v57  ;;  %v649_v31 = vrot.slane %v1254_v52, %v1182_v24  ;;  %v653_v32 = vrot.slane %v1258_v58, %v1182_v24  ;;  %v697_v27 = vrot.slane %v1248_v41, %v1214_v39 }
  0xc6   : > { %v633_v28 = vadd.f32 %v629_v56, %v605_v13  ;;  %v701_v33 = vrot.slane %v1250_v50, %v1214_v39  ;;  %v705_v34 = vrot.slane %v1254_v52, %v1214_v39  ;;  %v709_v35 = vrot.slane %v1258_v58, %v1214_v39  ;;  %v760_v54 = vpop.permute.xlu1 %759 }
  0xc7   : > { %v654_v37 = vmul.f32 %v641_v29, %v636_v25  ;;  %v655_v40 = vmul.f32 %v645_v30, %v636_v25  ;;  %v656_v51 = vmul.f32 %v649_v31, %v636_v25  ;;  %v657_v53 = vmul.f32 %v653_v32, %v636_v25 }
  0xc8   : > { %v682_v49 = vmul.f32 %v669_v23, %v664_v11  ;;  %v683_v59 = vmul.f32 %v673_v18, %v664_v11  ;;  %v684_v24 = vmul.f32 %v677_v14, %v664_v11  ;;  %v685_v60 = vmul.f32 %v681_v19, %v664_v11  ;;  %v800_v55 = vpop.permute.xlu0 %799 }
  0xc9   : > { %v658_v61 = vadd.f32 %v654_v37, %v630_v21  ;;  %v659_v41 = vadd.f32 %v655_v40, %v631_v26  ;;  %v660_v62 = vadd.f32 %v656_v51, %v632_v22  ;;  %v661_v63 = vadd.f32 %v657_v53, %v633_v28 }
  0xca   : > { %v710_v50 = vmul.f32 %v697_v27, %v692_v36  ;;  %v711_v38 = vmul.f32 %v701_v33, %v692_v36  ;;  %v712_v42 = vmul.f32 %v705_v34, %v692_v36  ;;  %v713_v52 = vmul.f32 %v709_v35, %v692_v36  ;;  %v828_v13 = vpop.permute.xlu1 %827 }
  0xcb   : > { %v686_v43 = vadd.f32 %v682_v49, %v658_v61  ;;  %v687_v44 = vadd.f32 %v683_v59, %v659_v41  ;;  %v688_v39 = vadd.f32 %v684_v24, %v660_v62  ;;  %v689_v58 = vadd.f32 %v685_v60, %v661_v63 }
  0xcc   : > { %v777_v56 = vrot.slane %v772_v5, %v1172_v20  ;;  %v752_v57 = vrot.slane %v747_v12, %v1172_v20  ;;  %v765_v19 = vrot.slane %v760_v54, %v1172_v20  ;;  %v805_v21 = vrot.slane %v800_v55, %v1172_v20 }
  0xcd   : > { %v714_v0 = vadd.f32 %v710_v50, %v686_v43  ;;  %v715_v45 = vadd.f32 %v711_v38, %v687_v44  ;;  %v716_v46 = vadd.f32 %v712_v42, %v688_v39  ;;  %v717_v47 = vadd.f32 %v713_v52, %v689_v58 }
  0xce   : > { %v833_v29 = vrot.slane %v828_v13, %v1172_v20 }
  0xcf   : > { %v974_v48 = vmul.f32 -1.442695, %v714_v0  ;;  %v975_v1 = vmul.f32 -1.442695, %v715_v45  ;;  %v976_v2 = vmul.f32 -1.442695, %v716_v46 }
  0xd0   : > { %v977_v3 = vmul.f32 -1.442695, %v717_v47 }
  0xd1   : > { %1038 = vpow2.f32 %v974_v48 }
  0xd2   : > { %1040 = vpow2.f32 %v975_v1 }
  0xd3   : > { %1042 = vpow2.f32 %v976_v2 }
  0xd4   : > { %1044 = vpow2.f32 %v977_v3 }
  0xdb   : > { %v1039_v4 = vpop.eup %1038 }
  0xdc   : > { %v1041_v6 = vpop.eup %1040  ;;  %v730_v17 = vadd.f32 1.0, %v1039_v4 }
  0xdd   : > { %v1043_v7 = vpop.eup %1042  ;;  %v731_v8 = vadd.f32 1.0, %v1041_v6 }
  0xde   : > { %v1045_v9 = vpop.eup %1044  ;;  %v732_v10 = vadd.f32 1.0, %v1043_v7  ;;  %1046 = vrcp.f32 %v730_v17 }
  0xdf   : > { %v733_v11 = vadd.f32 1.0, %v1045_v9  ;;  %1048 = vrcp.f32 %v731_v8 }
  0xe0   : > { %1050 = vrcp.f32 %v732_v10 }
  0xe1   : > { %1052 = vrcp.f32 %v733_v11 }
  0xe8   : > { %v1047_v23 = vpop.eup %1046 }
  0xe9   : > { %v1049_v18 = vpop.eup %1048  ;;  %v778_v14 = vmul.f32 %v1047_v23, %v777_v56  ;;  %v753_v25 = vmul.f32 %v1047_v23, %v752_v57  ;;  %v806_v53 = vmul.f32 %v1047_v23, %v805_v21  ;;  %v834_v60 = vmul.f32 %v1047_v23, %v833_v29 }
  0xea   : > { %v1051_v26 = vpop.eup %1050  ;;  %v779_v22 = vmul.f32 %v1049_v18, %v777_v56  ;;  %v754_v28 = vmul.f32 %v1049_v18, %v752_v57  ;;  %v807_v49 = vmul.f32 %v1049_v18, %v805_v21  ;;  %v835_v61 = vmul.f32 %v1049_v18, %v833_v29 }
  0xeb   : > { %v1053_v30 = vpop.eup %1052  ;;  %v780_v31 = vmul.f32 %v1051_v26, %v777_v56  ;;  %v786_v32 = vrot.slane %v778_v14, 1  ;;  %v755_v27 = vmul.f32 %v1051_v26, %v752_v57  ;;  %v766_v33 = vadd.f32 %v765_v19, %v753_v25 }
  0xec   : > { %v781_v34 = vmul.f32 %v1053_v30, %v777_v56  ;;  %v787_v35 = vrot.slane %v779_v22, 1  ;;  %v756_v36 = vmul.f32 %v1053_v30, %v752_v57  ;;  %v767_v37 = vadd.f32 %v765_v19, %v754_v28 }
  0xed   : > { %v788_v40 = vrot.slane %v780_v31, 1  ;;  %v768_v51 = vadd.f32 %v765_v19, %v755_v27  ;;  %v794_v41 = vadd.f32 %v786_v32, %v766_v33  ;;  %v836_v20 = vmul.f32 %v1051_v26, %v833_v29 }
  0xee   : > { %v789_v59 = vrot.slane %v781_v34, 1  ;;  %v769_v24 = vadd.f32 %v765_v19, %v756_v36  ;;  %v795_v62 = vadd.f32 %v787_v35, %v767_v37  ;;  %v837_v63 = vmul.f32 %v1053_v30, %v833_v29 }
  0xef   : > { %v796_v50 = vadd.f32 %v788_v40, %v768_v51  ;;  %v808_v42 = vmul.f32 %v1051_v26, %v805_v21  ;;  %v809_v52 = vmul.f32 %v1053_v30, %v805_v21  ;;  %v814_v43 = vrot.slane %v806_v53, 2 }
  0xf0   : > { %v797_v38 = vadd.f32 %v789_v59, %v769_v24  ;;  %v815_v44 = vrot.slane %v807_v49, 2  ;;  %v842_v0 = vrot.slane %v834_v60, 3  ;;  %v843_v45 = vrot.slane %v835_v61, 3 }
  0xf1   : > { %v816_v39 = vrot.slane %v808_v42, 2  ;;  %v817_v58 = vrot.slane %v809_v52, 2  ;;  %v822_v46 = vadd.f32 %v814_v43, %v794_v41  ;;  %v844_v48 = vrot.slane %v836_v20, 3 }
  0xf2   : > { %v823_v47 = vadd.f32 %v815_v44, %v795_v62  ;;  %v845_v1 = vrot.slane %v837_v63, 3  ;;  %v1086_v18 = vmov 1966171168  }
  0xf3   : > { %v824_v2 = vadd.f32 %v816_v39, %v796_v50  ;;  %v825_v3 = vadd.f32 %v817_v58, %v797_v38  ;;  %v850_v4 = vadd.f32 %v842_v0, %v822_v46  ;;  %v885_v14 = vunpack.c.l.s4 %v1086_v18 }
  0xf4   : > { %v851_v5 = vadd.f32 %v843_v45, %v823_v47 }
  0xf5   : > { %v852_v6 = vadd.f32 %v844_v48, %v824_v2  ;;  %v853_v17 = vadd.f32 %v845_v1, %v825_v3  ;;  %v978_v7 = vmul.f32 -1.442695, %v850_v4  ;;  %v886_v19 = vunpack.c.0.s8 %v885_v14 }
  0xf6   : > { %v979_v8 = vmul.f32 -1.442695, %v851_v5 }
  0xf7   : > { %v980_v9 = vmul.f32 -1.442695, %v852_v6  ;;  %v981_v10 = vmul.f32 -1.442695, %v853_v17  ;;  %1054 = vpow2.f32 %v978_v7  ;;  %v889_v21 = vsub.s32 %v886_v19, %v1159_v16 }
  0xf8   : > { %1056 = vpow2.f32 %v979_v8 }
  0xf9   : > { %1058 = vpow2.f32 %v980_v9 }
  0xfa   : > { %1060 = vpow2.f32 %v981_v10 }
 0x101   : > { %v1055_v11 = vpop.eup %1054 }
 0x102   : > { %v1057_v12 = vpop.eup %1056  ;;  %v866_v54 = vadd.f32 1.0, %v1055_v11 }
 0x103   : > { %v1059_v55 = vpop.eup %1058  ;;  %v867_v56 = vadd.f32 1.0, %v1057_v12 }
 0x104   : > { %v1061_v57 = vpop.eup %1060  ;;  %v868_v13 = vadd.f32 1.0, %v1059_v55  ;;  %1062 = vrcp.f32 %v866_v54 }
 0x105   : > { %v869_v23 = vadd.f32 1.0, %v1061_v57  ;;  %1064 = vrcp.f32 %v867_v56 }
 0x106   : > { %1066 = vrcp.f32 %v868_v13 }
 0x107   : > { %1068 = vrcp.f32 %v869_v23 }
 0x10e   : > { %v1063_v25 = vpop.eup %1062 }
 0x10f   : > { %v1065_v26 = vpop.eup %1064 }
 0x110   : > { %v1067_v22 = vpop.eup %1066  ;;  %v882_v28 = vcombine.low %v1063_v25, %v1065_v26 }
 0x111   : > { %v1069_v29 = vpop.eup %1068 }
 0x112   : > { %v883_v30 = vcombine.low %v1067_v22, %v1069_v29  ;;  %v890_v31 = vrot.slane %v882_v28, %v889_v21 }
 0x114   : > { %v897_v32 = vrot.slane %v883_v30, %v889_v21 }
 0x116   : > { %v898_v27 = vcombine.low %v890_v31, %v897_v32 }
 0x118   : > { %v905_v33 = vrot.slane %v898_v27, %v889_v21 }
 0x11a   : > { %911 = vst.msk [vmem:[%s280_s21] sm:$0xf] %vm909_vm0, %v905_v33 }
 0x11b PF: > { %s19_s26 = sadd.s32 1, %s1076_s26  }
 0x11c   : > { %p16_p4 = scmp.ge.s32.totalorder %s19_s26, 4  }
 0x11e   :  { %18 = sbr.rel (!%p16_p4) target bundleno = 3 (0x3), region = 78 }

</bundles_post_ra>
